<compile_context>
chip_gen: v5e
topology: v5e:2x2
jax: 0.10.0
libtpu: 0.0.40
codegen_flags: <defaults>
</compile_context>

<pallas_src>
import functools

import jax
import jax.numpy as jnp
from jax.experimental import pallas as pl
from jax.experimental.pallas import tpu as pltpu

HIDDEN1, HIDDEN2, HIDDEN3 = 256, 256, 128
LANE = 128      # last-layer weights padded to 128 output lanes for the MXU
SUBLANE = 8
DEFAULT_TILE_B = 1024


def _round_up(n, m):
    return ((n + m - 1) // m) * m


def _device_kind():
    try:
        return jax.devices()[0].device_kind.lower()
    except Exception:
        return ""


def _tensorcores_per_chip():
    kind = _device_kind()
    return 2 if any(t in kind for t in ("v7", "v4", "v5p")) else 1


def _bf16_vpu():
    # v6e / v7x have bf16 VPUs; v5e (and older) do not -> keep f32 elementwise.
    kind = _device_kind()
    if not kind:
        return False
    return not any(t in kind for t in ("v2", "v3", "v4", "v5"))


def mlp_kernel(x_ref,
               w1_ref, b1_ref,
               w2_ref, b2_ref,
               w3_ref, b3_ref,
               w4_ref, b4_ref,
               o_ref, *, act_size, bf16_elementwise):
    def relu_cast(h_f32):
        if bf16_elementwise:
            # v6e/v7x: bf16 VPU -> 2 rows/vreg, halves the VALU work.
            return jnp.maximum(h_f32.astype(jnp.bfloat16), 0)
        # v5e: no bf16 VPU -> ReLU in f32, then cast for the next MXU pass.
        return jnp.maximum(h_f32, 0.0).astype(jnp.bfloat16)

    x = x_ref[...]  # bf16 (cast in wrapper); bias add / accumulation in f32.

    h = jnp.dot(x, w1_ref[...], preferred_element_type=jnp.float32) + b1_ref[...]
    h = relu_cast(h)
    h = jnp.dot(h, w2_ref[...], preferred_element_type=jnp.float32) + b2_ref[...]
    h = relu_cast(h)
    h = jnp.dot(h, w3_ref[...], preferred_element_type=jnp.float32) + b3_ref[...]
    h = relu_cast(h)
    out = jnp.dot(h, w4_ref[...], preferred_element_type=jnp.float32) + b4_ref[...]

    # Store only the useful Q-value columns (masked vst but ~64x fewer HBM
    # bytes than a 128-lane padded f32 writeback + external slice).
    o_ref[...] = out[:, :act_size]
    # TODO(synk): optionally fuse argmax-over-actions into this epilogue when
    # used purely for action selection (padded batch rows must be masked).


def network_forward(x, params, action_size, *, tile_b=DEFAULT_TILE_B):
    """x: (batch, stateSize) float32. params: kernel-format dict (see init_params).
    Returns (batch, action_size) float32 Q-values."""
    batch, in_dim = x.shape
    assert 0 < action_size <= LANE, "actionSize must be in [1, 128]"

    # Batch tile: multiple of 8 sublanes; large to amortize per-step overhead.
    padded_batch = _round_up(max(batch, 1), SUBLANE)
    tb = min(_round_up(tile_b, SUBLANE), padded_batch)
    # On 2-TensorCore chips (v7x) keep >= 2 grid steps so the "parallel"
    # batch axis is sharded across both cores.
    if _tensorcores_per_chip() > 1 and padded_batch >= 2 * SUBLANE:
        tb = min(tb, _round_up((padded_batch + 1) // 2, SUBLANE))
    padded_batch = _round_up(padded_batch, tb)

    # Cast once in the wrapper (halves x DMA, removes a per-tile VPU cast).
    x = x.astype(jnp.bfloat16)
    if padded_batch != batch:
        x = jnp.pad(x, ((0, padded_batch - batch), (0, 0)))

    grid = (padded_batch // tb,)

    weight_elems = (in_dim * HIDDEN1 + HIDDEN1 * HIDDEN2
                    + HIDDEN2 * HIDDEN3 + HIDDEN3 * LANE)
    cost = pl.CostEstimate(
        flops=2 * padded_batch * weight_elems,
        transcendentals=0,
        bytes_accessed=int(padded_batch * in_dim * 2          # x (bf16)
                           + weight_elems * 2                   # weights (bf16)
                           + (HIDDEN1 + HIDDEN2 + HIDDEN3 + LANE) * 4  # biases
                           + padded_batch * action_size * 4))   # output (f32)

    kernel = functools.partial(mlp_kernel, act_size=action_size,
                               bf16_elementwise=_bf16_vpu())

    def call(single_buffer_weights):
        def resident(shape):
            # Constant index_map -> block stays VMEM-resident across steps.
            kw = {}
            if single_buffer_weights:
                kw["pipeline_mode"] = pl.Buffered(1)  # invariant: no double buffer
            return pl.BlockSpec(shape, lambda i: (0, 0), **kw)

        return pl.pallas_call(
            kernel,
            out_shape=jax.ShapeDtypeStruct((padded_batch, action_size), jnp.float32),
            grid=grid,
            in_specs=[
                pl.BlockSpec((tb, in_dim), lambda i: (i, 0)),   # x tile (pipelined)
                resident((in_dim, HIDDEN1)), resident((1, HIDDEN1)),
                resident((HIDDEN1, HIDDEN2)), resident((1, HIDDEN2)),
                resident((HIDDEN2, HIDDEN3)), resident((1, HIDDEN3)),
                resident((HIDDEN3, LANE)), resident((1, LANE)),
            ],
            # Last dim == full array dim (action_size), so the block is legal.
            out_specs=pl.BlockSpec((tb, action_size), lambda i: (i, 0)),
            compiler_params=pltpu.CompilerParams(
                dimension_semantics=("parallel",)),             # megacore on v7x
            cost_estimate=cost,
        )(x,
          params["w1"], params["b1"],
          params["w2"], params["b2"],
          params["w3"], params["b3"],
          params["w4"], params["b4"])

    try:
        out = call(single_buffer_weights=True)
    except Exception:
        # pl.Buffered(1) is a minor optimization; fall back to default
        # double-buffering if this jax version rejects it.
        out = call(single_buffer_weights=False)

    return out[:batch]


def init_params(key, state_size, action_size):
    """PyTorch nn.Linear default init: U(-1/sqrt(fan_in), 1/sqrt(fan_in)).
    Kernel format: weights transposed to (in, out), stored in bf16; biases f32;
    last layer padded to LANE output columns (zeros) for a clean MXU pass."""
    assert action_size <= LANE, "actionSize must be <= 128 for this kernel"
    dims = [(state_size, HIDDEN1), (HIDDEN1, HIDDEN2),
            (HIDDEN2, HIDDEN3), (HIDDEN3, action_size)]
    params = {}
    keys = jax.random.split(key, 2 * len(dims))
    for i, (fan_in, fan_out) in enumerate(dims):
        bound = float(fan_in) ** -0.5
        w = jax.random.uniform(keys[2 * i], (fan_in, fan_out),
                               minval=-bound, maxval=bound, dtype=jnp.float32)
        b = jax.random.uniform(keys[2 * i + 1], (1, fan_out),
                               minval=-bound, maxval=bound, dtype=jnp.float32)
        if i == len(dims) - 1:  # pad last layer out-dim to 128 lanes
            w = jnp.pad(w, ((0, 0), (0, LANE - fan_out)))
            b = jnp.pad(b, ((0, 0), (0, LANE - fan_out)))
        params[f"w{i + 1}"] = w.astype(jnp.bfloat16)
        params[f"b{i + 1}"] = b  # f32: bias add happens on the f32 accumulator
    return params


def ref_forward(x, params, action_size):
    """Pure-JAX reference with the same precision policy as the kernel
    (bf16 operands, f32 accumulate, f32 bias, ReLU+bf16 round between layers)."""
    h = x.astype(jnp.bfloat16).astype(jnp.float32)
    for i in (1, 2, 3):
        w = params[f"w{i}"].astype(jnp.float32)
        h = jnp.maximum(h @ w + params[f"b{i}"], 0.0)
        h = h.astype(jnp.bfloat16).astype(jnp.float32)
    out = h @ params["w4"].astype(jnp.float32) + params["b4"]
    return out[:, :action_size]


if __name__ == "__main__":
    state_size = 4     # CartPole observation dim
    action_size = 2    # CartPole action dim

    key = jax.random.PRNGKey(0)
    k_param, k_x1, k_x2 = jax.random.split(key, 3)
    params = init_params(k_param, state_size, action_size)

    # Small single-tile case.
    batch = 8
    x = jax.random.normal(k_x1, (batch, state_size), dtype=jnp.float32)
    out = jax.block_until_ready(network_forward(x, params, action_size))
    ref = ref_forward(x, params, action_size)
    assert out.shape == (batch, action_size)
    assert out.dtype == jnp.float32
    assert jnp.allclose(out, ref, atol=2e-2, rtol=2e-2)

    # Larger, non-multiple-of-tile batch exercising padding + multi-step grid.
    batch2 = 1000
    x2 = jax.random.normal(k_x2, (batch2, state_size), dtype=jnp.float32)
    out2 = jax.block_until_ready(
        network_forward(x2, params, action_size, tile_b=256))
    ref2 = ref_forward(x2, params, action_size)
    assert out2.shape == (batch2, action_size)
    assert jnp.allclose(out2, ref2, atol=2e-2, rtol=2e-2)

    print("KERNEL_OK")
</pallas_src>

<mosaic_0001>
module attributes {stable_mosaic.version = 11 : i64} {
  func.func @mlp_kernel(%arg0: i32, %arg1: memref<8x4xbf16, #tpu.memory_space<vmem>>, %arg2: memref<4x256xbf16, #tpu.memory_space<vmem>>, %arg3: memref<1x256xf32, #tpu.memory_space<vmem>>, %arg4: memref<256x256xbf16, #tpu.memory_space<vmem>>, %arg5: memref<1x256xf32, #tpu.memory_space<vmem>>, %arg6: memref<256x128xbf16, #tpu.memory_space<vmem>>, %arg7: memref<1x128xf32, #tpu.memory_space<vmem>>, %arg8: memref<128x128xbf16, #tpu.memory_space<vmem>>, %arg9: memref<1x128xf32, #tpu.memory_space<vmem>>, %arg10: memref<8x2xf32, #tpu.memory_space<vmem>>) attributes {dimension_semantics = [#tpu.dimension_semantics<parallel>], iteration_bounds = array<i64: 1>, scalar_prefetch = 0 : i64, scratch_operands = 0 : i64, tpu.core_type = #tpu.core_type<tc>, window_params = [{transform_indices = @transform_0, window_bounds = array<i64: 8, 4>}, {pipeline_mode = #tpu.pipeline_mode<synchronous>, transform_indices = @transform_1, window_bounds = array<i64: 4, 256>}, {pipeline_mode = #tpu.pipeline_mode<synchronous>, transform_indices = @transform_2, window_bounds = array<i64: 1, 256>}, {pipeline_mode = #tpu.pipeline_mode<synchronous>, transform_indices = @transform_3, window_bounds = array<i64: 256, 256>}, {pipeline_mode = #tpu.pipeline_mode<synchronous>, transform_indices = @transform_4, window_bounds = array<i64: 1, 256>}, {pipeline_mode = #tpu.pipeline_mode<synchronous>, transform_indices = @transform_5, window_bounds = array<i64: 256, 128>}, {pipeline_mode = #tpu.pipeline_mode<synchronous>, transform_indices = @transform_6, window_bounds = array<i64: 1, 128>}, {pipeline_mode = #tpu.pipeline_mode<synchronous>, transform_indices = @transform_7, window_bounds = array<i64: 128, 128>}, {pipeline_mode = #tpu.pipeline_mode<synchronous>, transform_indices = @transform_8, window_bounds = array<i64: 1, 128>}, {transform_indices = @transform_9, window_bounds = array<i64: 8, 2>}]} {
    %c0 = arith.constant 0 : index
    %c0_0 = arith.constant 0 : index
    %0 = vector.load %arg1[%c0, %c0_0] : memref<8x4xbf16, #tpu.memory_space<vmem>>, vector<8x4xbf16>
    %c0_1 = arith.constant 0 : index
    %c0_2 = arith.constant 0 : index
    %1 = vector.load %arg2[%c0_1, %c0_2] : memref<4x256xbf16, #tpu.memory_space<vmem>>, vector<4x256xbf16>
    %cst = arith.constant dense<0.000000e+00> : vector<8x256xf32>
    %2 = tpu.matmul %0, %1, %cst {dimension_numbers = #tpu.dot_dimension_numbers<[1], [0], [0], [1], [0, 0, 1, 1], [], []>} : vector<8x4xbf16>, vector<4x256xbf16>, vector<8x256xf32> -> vector<8x256xf32>
    %c0_3 = arith.constant 0 : index
    %c0_4 = arith.constant 0 : index
    %3 = vector.load %arg3[%c0_3, %c0_4] : memref<1x256xf32, #tpu.memory_space<vmem>>, vector<1x256xf32>
    %4 = vector.broadcast %3 : vector<1x256xf32> to vector<8x256xf32>
    %5 = arith.addf %2, %4 : vector<8x256xf32>
    %6 = arith.truncf %5 : vector<8x256xf32> to vector<8x256xbf16>
    %cst_5 = arith.constant 0.000000e+00 : bf16
    %7 = vector.broadcast %cst_5 : bf16 to vector<8x256xbf16>
    %8 = arith.maximumf %6, %7 : vector<8x256xbf16>
    %c0_6 = arith.constant 0 : index
    %c0_7 = arith.constant 0 : index
    %9 = vector.load %arg4[%c0_6, %c0_7] : memref<256x256xbf16, #tpu.memory_space<vmem>>, vector<256x256xbf16>
    %cst_8 = arith.constant dense<0.000000e+00> : vector<8x256xf32>
    %10 = tpu.matmul %8, %9, %cst_8 {dimension_numbers = #tpu.dot_dimension_numbers<[1], [0], [0], [1], [0, 0, 1, 1], [], []>} : vector<8x256xbf16>, vector<256x256xbf16>, vector<8x256xf32> -> vector<8x256xf32>
    %c0_9 = arith.constant 0 : index
    %c0_10 = arith.constant 0 : index
    %11 = vector.load %arg5[%c0_9, %c0_10] : memref<1x256xf32, #tpu.memory_space<vmem>>, vector<1x256xf32>
    %12 = vector.broadcast %11 : vector<1x256xf32> to vector<8x256xf32>
    %13 = arith.addf %10, %12 : vector<8x256xf32>
    %14 = arith.truncf %13 : vector<8x256xf32> to vector<8x256xbf16>
    %cst_11 = arith.constant 0.000000e+00 : bf16
    %15 = vector.broadcast %cst_11 : bf16 to vector<8x256xbf16>
    %16 = arith.maximumf %14, %15 : vector<8x256xbf16>
    %c0_12 = arith.constant 0 : index
    %c0_13 = arith.constant 0 : index
    %17 = vector.load %arg6[%c0_12, %c0_13] : memref<256x128xbf16, #tpu.memory_space<vmem>>, vector<256x128xbf16>
    %cst_14 = arith.constant dense<0.000000e+00> : vector<8x128xf32>
    %18 = tpu.matmul %16, %17, %cst_14 {dimension_numbers = #tpu.dot_dimension_numbers<[1], [0], [0], [1], [0, 0, 1, 1], [], []>} : vector<8x256xbf16>, vector<256x128xbf16>, vector<8x128xf32> -> vector<8x128xf32>
    %c0_15 = arith.constant 0 : index
    %c0_16 = arith.constant 0 : index
    %19 = vector.load %arg7[%c0_15, %c0_16] : memref<1x128xf32, #tpu.memory_space<vmem>>, vector<1x128xf32>
    %20 = vector.broadcast %19 : vector<1x128xf32> to vector<8x128xf32>
    %21 = arith.addf %18, %20 : vector<8x128xf32>
    %22 = arith.truncf %21 : vector<8x128xf32> to vector<8x128xbf16>
    %cst_17 = arith.constant 0.000000e+00 : bf16
    %23 = vector.broadcast %cst_17 : bf16 to vector<8x128xbf16>
    %24 = arith.maximumf %22, %23 : vector<8x128xbf16>
    %c0_18 = arith.constant 0 : index
    %c0_19 = arith.constant 0 : index
    %25 = vector.load %arg8[%c0_18, %c0_19] : memref<128x128xbf16, #tpu.memory_space<vmem>>, vector<128x128xbf16>
    %cst_20 = arith.constant dense<0.000000e+00> : vector<8x128xf32>
    %26 = tpu.matmul %24, %25, %cst_20 {dimension_numbers = #tpu.dot_dimension_numbers<[1], [0], [0], [1], [0, 0, 1, 1], [], []>} : vector<8x128xbf16>, vector<128x128xbf16>, vector<8x128xf32> -> vector<8x128xf32>
    %c0_21 = arith.constant 0 : index
    %c0_22 = arith.constant 0 : index
    %27 = vector.load %arg9[%c0_21, %c0_22] : memref<1x128xf32, #tpu.memory_space<vmem>>, vector<1x128xf32>
    %28 = vector.broadcast %27 : vector<1x128xf32> to vector<8x128xf32>
    %29 = arith.addf %26, %28 : vector<8x128xf32>
    %30 = vector.extract_strided_slice %29 {offsets = [0, 0], sizes = [8, 2], strides = [1, 1]} : vector<8x128xf32> to vector<8x2xf32>
    %c0_23 = arith.constant 0 : index
    %c0_24 = arith.constant 0 : index
    %31 = vector.load %arg10[%c0_23, %c0_24] : memref<8x2xf32, #tpu.memory_space<vmem>>, vector<8x2xf32>
    tpu.vector_store %arg10[%c0_23, %c0_24], %30 {strides = array<i32>} : memref<8x2xf32, #tpu.memory_space<vmem>>, vector<8x2xf32>,
    return
  }
  func.func @transform_0(%arg0: i32) -> (i32, i32) {
    %c0_i32 = arith.constant 0 : i32
    %c0_i32_0 = arith.constant 0 : i32
    return %arg0, %c0_i32 : i32, i32
  }
  func.func @transform_1(%arg0: i32) -> (i32, i32) {
    %c0_i32 = arith.constant 0 : i32
    %c0_i32_0 = arith.constant 0 : i32
    %c0_i32_1 = arith.constant 0 : i32
    return %c0_i32, %c0_i32_0 : i32, i32
  }
  func.func @transform_2(%arg0: i32) -> (i32, i32) {
    %c0_i32 = arith.constant 0 : i32
    %c0_i32_0 = arith.constant 0 : i32
    %c0_i32_1 = arith.constant 0 : i32
    return %c0_i32, %c0_i32_0 : i32, i32
  }
  func.func @transform_3(%arg0: i32) -> (i32, i32) {
    %c0_i32 = arith.constant 0 : i32
    %c0_i32_0 = arith.constant 0 : i32
    %c0_i32_1 = arith.constant 0 : i32
    return %c0_i32, %c0_i32_0 : i32, i32
  }
  func.func @transform_4(%arg0: i32) -> (i32, i32) {
    %c0_i32 = arith.constant 0 : i32
    %c0_i32_0 = arith.constant 0 : i32
    %c0_i32_1 = arith.constant 0 : i32
    return %c0_i32, %c0_i32_0 : i32, i32
  }
  func.func @transform_5(%arg0: i32) -> (i32, i32) {
    %c0_i32 = arith.constant 0 : i32
    %c0_i32_0 = arith.constant 0 : i32
    %c0_i32_1 = arith.constant 0 : i32
    return %c0_i32, %c0_i32_0 : i32, i32
  }
  func.func @transform_6(%arg0: i32) -> (i32, i32) {
    %c0_i32 = arith.constant 0 : i32
    %c0_i32_0 = arith.constant 0 : i32
    %c0_i32_1 = arith.constant 0 : i32
    return %c0_i32, %c0_i32_0 : i32, i32
  }
  func.func @transform_7(%arg0: i32) -> (i32, i32) {
    %c0_i32 = arith.constant 0 : i32
    %c0_i32_0 = arith.constant 0 : i32
    %c0_i32_1 = arith.constant 0 : i32
    return %c0_i32, %c0_i32_0 : i32, i32
  }
  func.func @transform_8(%arg0: i32) -> (i32, i32) {
    %c0_i32 = arith.constant 0 : i32
    %c0_i32_0 = arith.constant 0 : i32
    %c0_i32_1 = arith.constant 0 : i32
    return %c0_i32, %c0_i32_0 : i32, i32
  }
  func.func @transform_9(%arg0: i32) -> (i32, i32) {
    %c0_i32 = arith.constant 0 : i32
    %c0_i32_0 = arith.constant 0 : i32
    return %arg0, %c0_i32 : i32, i32
  }
}

module attributes {stable_mosaic.version = 11 : i64} {
  func.func @mlp_kernel(%arg0: i32, %arg1: memref<8x4xbf16, #tpu.memory_space<vmem>>, %arg2: memref<4x256xbf16, #tpu.memory_space<vmem>>, %arg3: memref<1x256xf32, #tpu.memory_space<vmem>>, %arg4: memref<256x256xbf16, #tpu.memory_space<vmem>>, %arg5: memref<1x256xf32, #tpu.memory_space<vmem>>, %arg6: memref<256x128xbf16, #tpu.memory_space<vmem>>, %arg7: memref<1x128xf32, #tpu.memory_space<vmem>>, %arg8: memref<128x128xbf16, #tpu.memory_space<vmem>>, %arg9: memref<1x128xf32, #tpu.memory_space<vmem>>, %arg10: memref<8x2xf32, #tpu.memory_space<vmem>>) attributes {dimension_semantics = [#tpu.dimension_semantics<parallel>], iteration_bounds = array<i64: 1>, scalar_prefetch = 0 : i64, scratch_operands = 0 : i64, tpu.core_type = #tpu.core_type<tc>, window_params = [{transform_indices = @transform_0, window_bounds = array<i64: 8, 4>}, {pipeline_mode = #tpu.pipeline_mode<synchronous>, transform_indices = @transform_1, window_bounds = array<i64: 4, 256>}, {pipeline_mode = #tpu.pipeline_mode<synchronous>, transform_indices = @transform_2, window_bounds = array<i64: 1, 256>}, {pipeline_mode = #tpu.pipeline_mode<synchronous>, transform_indices = @transform_3, window_bounds = array<i64: 256, 256>}, {pipeline_mode = #tpu.pipeline_mode<synchronous>, transform_indices = @transform_4, window_bounds = array<i64: 1, 256>}, {pipeline_mode = #tpu.pipeline_mode<synchronous>, transform_indices = @transform_5, window_bounds = array<i64: 256, 128>}, {pipeline_mode = #tpu.pipeline_mode<synchronous>, transform_indices = @transform_6, window_bounds = array<i64: 1, 128>}, {pipeline_mode = #tpu.pipeline_mode<synchronous>, transform_indices = @transform_7, window_bounds = array<i64: 128, 128>}, {pipeline_mode = #tpu.pipeline_mode<synchronous>, transform_indices = @transform_8, window_bounds = array<i64: 1, 128>}, {transform_indices = @transform_9, window_bounds = array<i64: 8, 2>}]} {
    %c0 = arith.constant 0 : index
    %c0_0 = arith.constant 0 : index
    %0 = vector.load %arg1[%c0, %c0_0] : memref<8x4xbf16, #tpu.memory_space<vmem>>, vector<8x4xbf16>
    %c0_1 = arith.constant 0 : index
    %c0_2 = arith.constant 0 : index
    %1 = vector.load %arg2[%c0_1, %c0_2] : memref<4x256xbf16, #tpu.memory_space<vmem>>, vector<4x256xbf16>
    %cst = arith.constant dense<0.000000e+00> : vector<8x256xf32>
    %2 = tpu.matmul %0, %1, %cst {dimension_numbers = #tpu.dot_dimension_numbers<[1], [0], [0], [1], [0, 0, 1, 1], [], []>} : vector<8x4xbf16>, vector<4x256xbf16>, vector<8x256xf32> -> vector<8x256xf32>
    %c0_3 = arith.constant 0 : index
    %c0_4 = arith.constant 0 : index
    %3 = vector.load %arg3[%c0_3, %c0_4] : memref<1x256xf32, #tpu.memory_space<vmem>>, vector<1x256xf32>
    %4 = vector.broadcast %3 : vector<1x256xf32> to vector<8x256xf32>
    %5 = arith.addf %2, %4 : vector<8x256xf32>
    %6 = arith.truncf %5 : vector<8x256xf32> to vector<8x256xbf16>
    %cst_5 = arith.constant 0.000000e+00 : bf16
    %7 = vector.broadcast %cst_5 : bf16 to vector<8x256xbf16>
    %8 = arith.maximumf %6, %7 : vector<8x256xbf16>
    %c0_6 = arith.constant 0 : index
    %c0_7 = arith.constant 0 : index
    %9 = vector.load %arg4[%c0_6, %c0_7] : memref<256x256xbf16, #tpu.memory_space<vmem>>, vector<256x256xbf16>
    %cst_8 = arith.constant dense<0.000000e+00> : vector<8x256xf32>
    %10 = tpu.matmul %8, %9, %cst_8 {dimension_numbers = #tpu.dot_dimension_numbers<[1], [0], [0], [1], [0, 0, 1, 1], [], []>} : vector<8x256xbf16>, vector<256x256xbf16>, vector<8x256xf32> -> vector<8x256xf32>
    %c0_9 = arith.constant 0 : index
    %c0_10 = arith.constant 0 : index
    %11 = vector.load %arg5[%c0_9, %c0_10] : memref<1x256xf32, #tpu.memory_space<vmem>>, vector<1x256xf32>
    %12 = vector.broadcast %11 : vector<1x256xf32> to vector<8x256xf32>
    %13 = arith.addf %10, %12 : vector<8x256xf32>
    %14 = arith.truncf %13 : vector<8x256xf32> to vector<8x256xbf16>
    %cst_11 = arith.constant 0.000000e+00 : bf16
    %15 = vector.broadcast %cst_11 : bf16 to vector<8x256xbf16>
    %16 = arith.maximumf %14, %15 : vector<8x256xbf16>
    %c0_12 = arith.constant 0 : index
    %c0_13 = arith.constant 0 : index
    %17 = vector.load %arg6[%c0_12, %c0_13] : memref<256x128xbf16, #tpu.memory_space<vmem>>, vector<256x128xbf16>
    %cst_14 = arith.constant dense<0.000000e+00> : vector<8x128xf32>
    %18 = tpu.matmul %16, %17, %cst_14 {dimension_numbers = #tpu.dot_dimension_numbers<[1], [0], [0], [1], [0, 0, 1, 1], [], []>} : vector<8x256xbf16>, vector<256x128xbf16>, vector<8x128xf32> -> vector<8x128xf32>
    %c0_15 = arith.constant 0 : index
    %c0_16 = arith.constant 0 : index
    %19 = vector.load %arg7[%c0_15, %c0_16] : memref<1x128xf32, #tpu.memory_space<vmem>>, vector<1x128xf32>
    %20 = vector.broadcast %19 : vector<1x128xf32> to vector<8x128xf32>
    %21 = arith.addf %18, %20 : vector<8x128xf32>
    %22 = arith.truncf %21 : vector<8x128xf32> to vector<8x128xbf16>
    %cst_17 = arith.constant 0.000000e+00 : bf16
    %23 = vector.broadcast %cst_17 : bf16 to vector<8x128xbf16>
    %24 = arith.maximumf %22, %23 : vector<8x128xbf16>
    %c0_18 = arith.constant 0 : index
    %c0_19 = arith.constant 0 : index
    %25 = vector.load %arg8[%c0_18, %c0_19] : memref<128x128xbf16, #tpu.memory_space<vmem>>, vector<128x128xbf16>
    %cst_20 = arith.constant dense<0.000000e+00> : vector<8x128xf32>
    %26 = tpu.matmul %24, %25, %cst_20 {dimension_numbers = #tpu.dot_dimension_numbers<[1], [0], [0], [1], [0, 0, 1, 1], [], []>} : vector<8x128xbf16>, vector<128x128xbf16>, vector<8x128xf32> -> vector<8x128xf32>
    %c0_21 = arith.constant 0 : index
    %c0_22 = arith.constant 0 : index
    %27 = vector.load %arg9[%c0_21, %c0_22] : memref<1x128xf32, #tpu.memory_space<vmem>>, vector<1x128xf32>
    %28 = vector.broadcast %27 : vector<1x128xf32> to vector<8x128xf32>
    %29 = arith.addf %26, %28 : vector<8x128xf32>
    %30 = vector.extract_strided_slice %29 {offsets = [0, 0], sizes = [8, 2], strides = [1, 1]} : vector<8x128xf32> to vector<8x2xf32>
    %c0_23 = arith.constant 0 : index
    %c0_24 = arith.constant 0 : index
    %31 = vector.load %arg10[%c0_23, %c0_24] : memref<8x2xf32, #tpu.memory_space<vmem>>, vector<8x2xf32>
    tpu.vector_store %arg10[%c0_23, %c0_24], %30 {strides = array<i32>} : memref<8x2xf32, #tpu.memory_space<vmem>>, vector<8x2xf32>,
    return
  }
  func.func @transform_0(%arg0: i32) -> (i32, i32) {
    %c0_i32 = arith.constant 0 : i32
    %c0_i32_0 = arith.constant 0 : i32
    return %arg0, %c0_i32 : i32, i32
  }
  func.func @transform_1(%arg0: i32) -> (i32, i32) {
    %c0_i32 = arith.constant 0 : i32
    %c0_i32_0 = arith.constant 0 : i32
    %c0_i32_1 = arith.constant 0 : i32
    return %c0_i32, %c0_i32_0 : i32, i32
  }
  func.func @transform_2(%arg0: i32) -> (i32, i32) {
    %c0_i32 = arith.constant 0 : i32
    %c0_i32_0 = arith.constant 0 : i32
    %c0_i32_1 = arith.constant 0 : i32
    return %c0_i32, %c0_i32_0 : i32, i32
  }
  func.func @transform_3(%arg0: i32) -> (i32, i32) {
    %c0_i32 = arith.constant 0 : i32
    %c0_i32_0 = arith.constant 0 : i32
    %c0_i32_1 = arith.constant 0 : i32
    return %c0_i32, %c0_i32_0 : i32, i32
  }
  func.func @transform_4(%arg0: i32) -> (i32, i32) {
    %c0_i32 = arith.constant 0 : i32
    %c0_i32_0 = arith.constant 0 : i32
    %c0_i32_1 = arith.constant 0 : i32
    return %c0_i32, %c0_i32_0 : i32, i32
  }
  func.func @transform_5(%arg0: i32) -> (i32, i32) {
    %c0_i32 = arith.constant 0 : i32
    %c0_i32_0 = arith.constant 0 : i32
    %c0_i32_1 = arith.constant 0 : i32
    return %c0_i32, %c0_i32_0 : i32, i32
  }
  func.func @transform_6(%arg0: i32) -> (i32, i32) {
    %c0_i32 = arith.constant 0 : i32
    %c0_i32_0 = arith.constant 0 : i32
    %c0_i32_1 = arith.constant 0 : i32
    return %c0_i32, %c0_i32_0 : i32, i32
  }
  func.func @transform_7(%arg0: i32) -> (i32, i32) {
    %c0_i32 = arith.constant 0 : i32
    %c0_i32_0 = arith.constant 0 : i32
    %c0_i32_1 = arith.constant 0 : i32
    return %c0_i32, %c0_i32_0 : i32, i32
  }
  func.func @transform_8(%arg0: i32) -> (i32, i32) {
    %c0_i32 = arith.constant 0 : i32
    %c0_i32_0 = arith.constant 0 : i32
    %c0_i32_1 = arith.constant 0 : i32
    return %c0_i32, %c0_i32_0 : i32, i32
  }
  func.func @transform_9(%arg0: i32) -> (i32, i32) {
    %c0_i32 = arith.constant 0 : i32
    %c0_i32_0 = arith.constant 0 : i32
    return %arg0, %c0_i32 : i32, i32
  }
}

</mosaic_0001>

<bundles_post_ra>
// kernel: tpu_custom_call.1
= control target key start
LH: loop header
LB: loop body
LE: loop exit
PB: predicated region body
PF: predicated region fallthrough
CT: control target
= control target key end

     0   :  { %14 = vsyncpa [#allocation3], 0  ;;  %s1098_s0 = inlined_call_operand.vmem [shape: bf16[8,4], index: 0, kind: input, shape index: {}]   ;;  %s1099_s1 = inlined_call_operand.vmem [shape: bf16[4,256], index: 1, kind: input, shape index: {}]   ;;  %s1100_s2 = inlined_call_operand.vmem [shape: f32[1,256], index: 2, kind: input, shape index: {}]   ;;  %s1101_s3 = inlined_call_operand.hbm [shape: bf16[256,256], index: 3, kind: input, shape index: {}]   ;;  %s1102_s4 = inlined_call_operand.vmem [shape: f32[1,256], index: 4, kind: input, shape index: {}]   ;;  %s1103_s5 = inlined_call_operand.hbm [shape: bf16[256,128], index: 5, kind: input, shape index: {}]   ;;  %s1104_s6 = inlined_call_operand.vmem [shape: f32[1,128], index: 6, kind: input, shape index: {}]   ;;  %s1105_s7 = inlined_call_operand.hbm [shape: bf16[128,128], index: 7, kind: input, shape index: {}]   ;;  %s1106_s8 = inlined_call_operand.vmem [shape: f32[1,128], index: 8, kind: input, shape index: {}]   ;;  %s1107_s9 = inlined_call_operand.vmem [shape: f32[8,2], index: 9, kind: output, shape index: {}]  }
   0x1   :  { %15 = vsyncpa [#allocation5], 0  ;;  %s41_s11 = sshll.u32 %s1103_s5, 4  ;;  %s1009_s12 = smov [#allocation4]   ;;  %s42_s11 = int_to_ptr.hbm [resolvable:$true] %s41_s11 }
   0x2   :  { %s43_s13 = sshll.u32 %s1009_s12, 4  ;;  %s26_s16 = sshll.u32 %s1101_s3, 4  ;;  %s44_s13 = int_to_ptr.vmem [resolvable:$true] %s43_s13  ;;  %s27_s16 = int_to_ptr.hbm [resolvable:$true] %s26_s16 }
   0x3   :  { %s1010_s17 = smov 64   ;;  %s1011_s18 = smov 4  }
   0x4   :  { %49 = dma.hbm_to_vmem [thread:$0]  %s42_s11, 2048, %s44_s13, [#allocation5], %s1010_s17, %s1010_s17, %s1011_s18  }
   0x5   :  { %s1012_s19 = smov [#allocation2]   ;;  %s1013_s21 = smov 128  }
   0x6   :  { %s28_s20 = sshll.u32 %s1012_s19, 4  ;;  %s1014_s22 = smov 8   ;;  %s29_s20 = int_to_ptr.vmem [resolvable:$true] %s28_s20 }
   0x7   :  { %34 = dma.hbm_to_vmem [thread:$0]  %s27_s16, 4096, %s29_s20, [#allocation3], %s1013_s21, %s1013_s21, %s1014_s22  }
   0x8   :  { %s56_s24 = sshll.u32 %s1105_s7, 4  ;;  %s1015_s25 = smov [#allocation6]   ;;  %s57_s24 = int_to_ptr.hbm [resolvable:$true] %s56_s24 }
   0x9   :  { %s58_s26 = sshll.u32 %s1015_s25, 4  ;;  %s59_s26 = int_to_ptr.vmem [resolvable:$true] %s58_s26 }
   0xa   :  { %64 = dma.hbm_to_vmem [thread:$0]  %s57_s24, 1024, %s59_s26, [#allocation5], %s1010_s17, %s1010_s17, %s1011_s18  }
   0xb   :  { %1005 = dma.done.wait [#allocation3], 4096  }
   0xc   :  { %1006 = vsyncadd [#allocation3], 4294963200 }
   0xd   :  { %1007 = dma.done.wait [#allocation5], 3072  }
   0xe   :  { %1008 = vsyncadd [#allocation5], 4294964224  ;;  %v81_v0 = vld [vmem:[%s1099_s1] sm:$0xf]  ;;  %v702_v1 = vld [vmem:[#allocation2 + $0x70] sm:$0xf] }
   0xf   :  { %89 = vst [vmem:[#allocation1] ss:$4 sm:$0xff] %v81_v0  ;;  %v883_v2 = vld [vmem:[#allocation2 + $0x74] sm:$0xf0]  ;;  %v882_v3 = vld [vmem:[#allocation2 + $0x74] sm:$0xf] }
  0x10   :  { %v703_v4 = vor.u32 %v883_v2, %v702_v1  ;;  %v704_v5 = vld [vmem:[#allocation2 + $0x78] sm:$0xf0]  ;;  %v694_v6 = vld [vmem:[#allocation2 + $0x60] sm:$0xf]  ;;  %v881_v7 = vld [vmem:[#allocation2 + $0x64] sm:$0xf0] }
  0x11   :  { %v707_v8 = vor.u32 %v882_v3, %v704_v5  ;;  %v880_v9 = vld [vmem:[#allocation2 + $0x64] sm:$0xf]  ;;  %v696_v10 = vld [vmem:[#allocation2 + $0x68] sm:$0xf0]  ;;  %v695_v11 = vor.u32 %v881_v7, %v694_v6  ;;  %v686_v13 = vld [vmem:[#allocation2 + $0x50] sm:$0xf] }
  0x12   :  { %332 = vmatpush.bf16.msra.mxu2 %v703_v4  ;;  %v699_v12 = vor.u32 %v880_v9, %v696_v10  ;;  %v879_v14 = vld [vmem:[#allocation2 + $0x54] sm:$0xf0]  ;;  %vm96_vm0 = vcmask 1041408   ;;  %vm92_vm1 = vcmask 31744   ;;  %v878_v15 = vld [vmem:[#allocation2 + $0x54] sm:$0xf] }
  0x13   :  { %358 = vmatpush.bf16.msra.mxu0 %v707_v8  ;;  %v688_v16 = vld [vmem:[#allocation2 + $0x58] sm:$0xf0]  ;;  %v678_v17 = vld [vmem:[#allocation2 + $0x40] sm:$0xf]  ;;  %v766_v18 = vld [vmem:[#allocation2 + $0xf0] sm:$0xf]  ;;  %v687_v23 = vor.u32 %v879_v14, %v686_v13 }
  0x14   :  { %v899_v19 = vld [vmem:[#allocation2 + $0xf4] sm:$0xf0]  ;;  %v691_v27 = vor.u32 %v878_v15, %v688_v16  ;;  %v877_v28 = vld [vmem:[#allocation2 + $0x44] sm:$0xf0]  ;;  %v898_v29 = vld [vmem:[#allocation2 + $0xf4] sm:$0xf] }
  0x15   :  { %v80_v21 = vld [vmem:[%s1098_s0] sm:$0xf]  ;;  %v767_v24 = vor.u32 %v899_v19, %v766_v18  ;;  %v876_v30 = vld [vmem:[#allocation2 + $0x44] sm:$0xf]  ;;  %v680_v31 = vld [vmem:[#allocation2 + $0x48] sm:$0xf0]  ;;  %v679_v36 = vor.u32 %v877_v28, %v678_v17 }
  0x16   :  { %v90_v20 = vld.sshfl [vmem:[#allocation1] sm:$0xff pattern:$0x73625140]  ;;  %v91_v22 = vld.sshfl [vmem:[#allocation1 + $0x8] sm:$0xff pattern:$0x73625140]  ;;  %333 = vmatpush.bf16.msra.mxu2 %v695_v11  ;;  %v683_v41 = vor.u32 %v876_v30, %v680_v31 }
  0x17   :  { %v97_v25 = vsel %vm96_vm0, %v90_v20, 0  ;;  %v99_v26 = vsel %vm96_vm0, %v91_v22, 0  ;;  %359 = vmatpush.bf16.msra.mxu0 %v699_v12  ;;  %345 = vmatpush.bf16.msra.mxu3 %v767_v24  ;;  %v768_v32 = vld [vmem:[#allocation2 + $0xf8] sm:$0xf0]  ;;  %v758_v34 = vld [vmem:[#allocation2 + $0xe0] sm:$0xf] }
  0x18   :  { %108 = vmatpush.bf16.msra.mxu1 %v97_v25  ;;  %v771_v33 = vor.u32 %v898_v29, %v768_v32  ;;  %v897_v35 = vld [vmem:[#allocation2 + $0xe4] sm:$0xf0]  ;;  %v670_v37 = vld [vmem:[#allocation2 + $0x30] sm:$0xf]  ;;  %v896_v39 = vld [vmem:[#allocation2 + $0xe4] sm:$0xf] }
  0x19   :  { %v759_v38 = vor.u32 %v897_v35, %v758_v34  ;;  %v760_v40 = vld [vmem:[#allocation2 + $0xe8] sm:$0xf0]  ;;  %v875_v42 = vld [vmem:[#allocation2 + $0x34] sm:$0xf0]  ;;  %v874_v43 = vld [vmem:[#allocation2 + $0x34] sm:$0xf] }
  0x1a   :  { %334 = vmatpush.bf16.msra.mxu2 %v687_v23  ;;  %v672_v44 = vld [vmem:[#allocation2 + $0x38] sm:$0xf0]  ;;  %v763_v45 = vor.u32 %v896_v39, %v760_v40  ;;  %v671_v46 = vor.u32 %v875_v42, %v670_v37  ;;  %v662_v48 = vld [vmem:[#allocation2 + $0x20] sm:$0xf]  ;;  %v873_v49 = vld [vmem:[#allocation2 + $0x24] sm:$0xf0] }
  0x1b   :  { %642 = vmatmul.msk.bf16.vlgmr.msra.gmra.mxu1 %vm92_vm1, %v80_v21  ;;  %360 = vmatpush.bf16.msra.mxu0 %v691_v27  ;;  %v675_v47 = vor.u32 %v874_v43, %v672_v44  ;;  %v872_v50 = vld [vmem:[#allocation2 + $0x24] sm:$0xf]  ;;  %v664_v51 = vld [vmem:[#allocation2 + $0x28] sm:$0xf0]  ;;  %v663_v52 = vor.u32 %v873_v49, %v662_v48  ;;  %v654_v54 = vld [vmem:[#allocation2 + $0x10] sm:$0xf] }
  0x1c   :  { %121 = vmatpush.bf16.msrb.mxu1 %v99_v26  ;;  %346 = vmatpush.bf16.msra.mxu3 %v759_v38  ;;  %v667_v53 = vor.u32 %v872_v50, %v664_v51  ;;  %v871_v55 = vld [vmem:[#allocation2 + $0x14] sm:$0xf0]  ;;  %v750_v56 = vld [vmem:[#allocation2 + $0xd0] sm:$0xf]  ;;  %v870_v59 = vld [vmem:[#allocation2 + $0x14] sm:$0xf] }
  0x1d   :  { %v655_v57 = vor.u32 %v871_v55, %v654_v54  ;;  %v895_v58 = vld [vmem:[#allocation2 + $0xd4] sm:$0xf0]  ;;  %v656_v60 = vld [vmem:[#allocation2 + $0x18] sm:$0xf0]  ;;  %v894_v63 = vld [vmem:[#allocation2 + $0xd4] sm:$0xf] }
  0x1e   :  { %335 = vmatpush.bf16.msra.mxu2 %v679_v36  ;;  %v751_v61 = vor.u32 %v895_v58, %v750_v56  ;;  %v659_v62 = vor.u32 %v870_v59, %v656_v60  ;;  %v752_v0 = vld [vmem:[#allocation2 + $0xd8] sm:$0xf0]  ;;  %v646_v2 = vld [vmem:[#allocation2] sm:$0xf]  ;;  %v869_v3 = vld [vmem:[#allocation2 + $0x4] sm:$0xf0] }
  0x1f   :  { %361 = vmatpush.bf16.msra.mxu0 %v683_v41  ;;  %v755_v1 = vor.u32 %v894_v63, %v752_v0  ;;  %v742_v4 = vld [vmem:[#allocation2 + $0xc0] sm:$0xf]  ;;  %v647_v5 = vor.u32 %v869_v3, %v646_v2  ;;  %v893_v6 = vld [vmem:[#allocation2 + $0xc4] sm:$0xf0]  ;;  %v868_v7 = vld [vmem:[#allocation2 + $0x4] sm:$0xf] }
  0x20   :  { %371 = vmatpush.bf16.msra.mxu1 %v771_v33  ;;  %347 = vmatpush.bf16.msra.mxu3 %v751_v61  ;;  %v648_v8 = vld [vmem:[#allocation2 + $0x8] sm:$0xf0]  ;;  %v743_v9 = vor.u32 %v893_v6, %v742_v4  ;;  %v892_v11 = vld [vmem:[#allocation2 + $0xc4] sm:$0xf]  ;;  %v734_v14 = vld [vmem:[#allocation2 + $0xb0] sm:$0xf] }
  0x21   :  { %v651_v10 = vor.u32 %v868_v7, %v648_v8  ;;  %v744_v12 = vld [vmem:[#allocation2 + $0xc8] sm:$0xf0]  ;;  %v891_v15 = vld [vmem:[#allocation2 + $0xb4] sm:$0xf0]  ;;  %v890_v16 = vld [vmem:[#allocation2 + $0xb4] sm:$0xf] }
  0x22   :  { %336 = vmatpush.bf16.msra.mxu2 %v671_v46  ;;  %v747_v13 = vor.u32 %v892_v11, %v744_v12  ;;  %v735_v17 = vor.u32 %v891_v15, %v734_v14  ;;  %v736_v18 = vld [vmem:[#allocation2 + $0xb8] sm:$0xf0]  ;;  %v726_v20 = vld [vmem:[#allocation2 + $0xa0] sm:$0xf]  ;;  %v888_v22 = vld [vmem:[#allocation2 + $0xa4] sm:$0xf] }
  0x23   :  { %362 = vmatpush.bf16.msra.mxu0 %v675_v47  ;;  %v739_v19 = vor.u32 %v890_v16, %v736_v18  ;;  %v728_v24 = vld [vmem:[#allocation2 + $0xa8] sm:$0xf0]  ;;  %v718_v26 = vld [vmem:[#allocation2 + $0x90] sm:$0xf]  ;;  %v887_v27 = vld [vmem:[#allocation2 + $0x94] sm:$0xf0] }
  0x24   :  { %372 = vmatpush.bf16.msra.mxu1 %v763_v45  ;;  %348 = vmatpush.bf16.msra.mxu3 %v743_v9  ;;  %v731_v25 = vor.u32 %v888_v22, %v728_v24  ;;  %v886_v28 = vld [vmem:[#allocation2 + $0x94] sm:$0xf]  ;;  %v719_v29 = vor.u32 %v887_v27, %v718_v26  ;;  %v720_v30 = vld [vmem:[#allocation2 + $0x98] sm:$0xf0]  ;;  %v710_v32 = vld [vmem:[#allocation2 + $0x80] sm:$0xf] }
  0x25   :  { %v723_v31 = vor.u32 %v886_v28, %v720_v30  ;;  %v885_v33 = vld [vmem:[#allocation2 + $0x84] sm:$0xf0]  ;;  %v884_v34 = vld [vmem:[#allocation2 + $0x84] sm:$0xf]  ;;  %v712_v36 = vld [vmem:[#allocation2 + $0x88] sm:$0xf0] }
  0x26   :  { %337 = vmatpush.bf16.msra.mxu2 %v663_v52  ;;  %v711_v35 = vor.u32 %v885_v33, %v710_v32  ;;  %v715_v37 = vor.u32 %v884_v34, %v712_v36  ;;  %v915_v38 = vld [vmem:[#allocation4 + $0x78] sm:$0xff]  ;;  %v914_v41 = vld [vmem:[#allocation4 + $0x70] sm:$0xff]  ;;  %v913_v54 = vld [vmem:[#allocation4 + $0x68] sm:$0xff]  ;;  %vm634_vm2 = vcmask 15360  }
  0x27   :  { %363 = vmatpush.bf16.msra.mxu0 %v667_v53  ;;  %v907_v39 = vld [vmem:[#allocation4 + $0x38] sm:$0xff]  ;;  %v906_v55 = vld [vmem:[#allocation4 + $0x30] sm:$0xff]  ;;  %v912_v56 = vld [vmem:[#allocation4 + $0x60] sm:$0xff] }
  0x28   :  { %373 = vmatpush.bf16.msra.mxu1 %v755_v1  ;;  %349 = vmatpush.bf16.msra.mxu3 %v735_v17  ;;  %v82_v40 = vld [vmem:[%s1100_s2] sm:$0x3]  ;;  %v904_v59 = vld [vmem:[#allocation4 + $0x20] sm:$0xff]  ;;  %v910_v60 = vld [vmem:[#allocation4 + $0x50] sm:$0xff] }
  0x29   :  { %v84_v42 = vperm.slane %v82_v40, 0  ;;  %v85_v48 = vperm.slane %v82_v40, 1  ;;  %v911_v58 = vld [vmem:[#allocation4 + $0x58] sm:$0xff]  ;;  %v902_v63 = vld [vmem:[#allocation4 + $0x10] sm:$0xff]  ;;  %v908_v0 = vld [vmem:[#allocation4 + $0x40] sm:$0xff] }
  0x2a   :  { %338 = vmatpush.bf16.msra.mxu2 %v655_v57  ;;  %v905_v57 = vld [vmem:[#allocation4 + $0x28] sm:$0xff]  ;;  %v903_v61 = vld [vmem:[#allocation4 + $0x18] sm:$0xff]  ;;  %v900_v2 = vld [vmem:[#allocation4] sm:$0xff] }
  0x2b   :  { %643 = vmatmul.msk.bf16.vlgmr.msrb.gmra.mxu1 %vm92_vm1, %v80_v21  ;;  %364 = vmatpush.bf16.msra.mxu0 %v659_v62  ;;  %v889_v21 = vld [vmem:[#allocation2 + $0xa4] sm:$0xf0]  ;;  %v923_v3 = vld [vmem:[#allocation6 + $0x38] sm:$0xff]  ;;  %v918_v27 = vld [vmem:[#allocation6 + $0x10] sm:$0xff] }
  0x2c   :  { %374 = vmatpush.bf16.msra.mxu1 %v747_v13  ;;  %v727_v23 = vor.u32 %v889_v21, %v726_v20  ;;  %v909_v62 = vld [vmem:[#allocation4 + $0x48] sm:$0xff]  ;;  %v166_v8 = vld [vmem:[%s1102_s4] sm:$0x3] }
  0x2d   :  { %v901_v1 = vld [vmem:[#allocation4 + $0x8] sm:$0xff]  ;;  %v169_v11 = vperm.slane %v166_v8, 1  ;;  %v168_v15 = vperm.slane %v166_v8, 0  ;;  %v919_v26 = vld [vmem:[#allocation6 + $0x18] sm:$0xff] }
  0x2e   :  { %339 = vmatpush.bf16.msra.mxu2 %v647_v5  ;;  %350 = vmatpush.bf16.msra.mxu3 %v727_v23  ;;  %v922_v5 = vld [vmem:[#allocation6 + $0x30] sm:$0xff]  ;;  %v921_v6 = vld [vmem:[#allocation6 + $0x28] sm:$0xff] }
  0x2f   :  { %365 = vmatpush.bf16.msra.mxu0 %v651_v10  ;;  %v920_v10 = vld [vmem:[#allocation6 + $0x20] sm:$0xff]  ;;  %v917_v28 = vld [vmem:[#allocation6 + $0x8] sm:$0xff] }
  0x30   :  { %375 = vmatpush.bf16.msra.mxu1 %v739_v19 }
  0x32   :  { %351 = vmatpush.bf16.msra.mxu3 %v719_v29  ;;  %523 = vmatpush.bf16.msrb.mxu2 %v907_v39  ;;  %v916_v29 = vld [vmem:[#allocation6] sm:$0xff]  ;;  %v932_v39 = vld [vmem:[%s1106_s8] ss:$0 sm:$0xff] }
  0x33   :  { %621 = vmatpush.bf16.msrb.mxu0 %v923_v3 }
  0x34   :  { %376 = vmatpush.bf16.msra.mxu1 %v731_v25 }
  0x36   :  { %352 = vmatpush.bf16.msra.mxu3 %v711_v35  ;;  %524 = vmatpush.bf16.msrb.mxu2 %v906_v55 }
  0x37   :  { %622 = vmatpush.bf16.msrb.mxu0 %v922_v5 }
  0x38   :  { %377 = vmatpush.bf16.msra.mxu1 %v723_v31  ;;  %v931_v31 = vld [vmem:[%s1104_s6] ss:$0 sm:$0xff] }
  0x3a   :  { %536 = vmatpush.bf16.msrb.mxu3 %v915_v38  ;;  %525 = vmatpush.bf16.msrb.mxu2 %v905_v57 }
  0x3b   :  { %623 = vmatpush.bf16.msrb.mxu0 %v921_v6 }
  0x3c   :  { %378 = vmatpush.bf16.msra.mxu1 %v715_v37 }
  0x3e   :  { %537 = vmatpush.bf16.msrb.mxu3 %v914_v41  ;;  %526 = vmatpush.bf16.msrb.mxu2 %v904_v59 }
  0x3f   :  { %624 = vmatpush.bf16.msrb.mxu0 %v920_v10 }
  0x42   :  { %538 = vmatpush.bf16.msrb.mxu3 %v913_v54  ;;  %527 = vmatpush.bf16.msrb.mxu2 %v903_v61 }
  0x43   :  { %625 = vmatpush.bf16.msrb.mxu0 %v919_v26 }
  0x46   :  { %539 = vmatpush.bf16.msrb.mxu3 %v912_v56  ;;  %528 = vmatpush.bf16.msrb.mxu2 %v902_v63 }
  0x47   :  { %626 = vmatpush.bf16.msrb.mxu0 %v918_v27 }
  0x4a   :  { %540 = vmatpush.bf16.msrb.mxu3 %v911_v58  ;;  %529 = vmatpush.bf16.msrb.mxu2 %v901_v1 }
  0x4b   :  { %627 = vmatpush.bf16.msrb.mxu0 %v917_v28 }
  0x4e   :  { %541 = vmatpush.bf16.msrb.mxu3 %v910_v60  ;;  %530 = vmatpush.bf16.msrb.mxu2 %v900_v2 }
  0x4f   :  { %628 = vmatpush.bf16.msrb.mxu0 %v916_v29 }
  0x52   :  { %542 = vmatpush.bf16.msrb.mxu3 %v909_v62 }
  0x56   :  { %543 = vmatpush.bf16.msrb.mxu3 %v908_v0 }
  0x98   :  { %v110_v43 = vpop.f32.mrf.mxu1 }
  0x99   :  { %v111_v44 = vadd.f32 %v110_v43, %v84_v42 }
  0x9b   :  { %v130_v45 = vmax.f32 %v111_v44, 0.0 }
  0x9d   :  { %v132_v46 = vpack.c.bf16 %v130_v45, %v130_v45 }
  0x9f   :  { %340 = vmatmul.bf16.vlgmr.msra.gmra.mxu2 %v132_v46  ;;  %366 = vmatmul.bf16.vlgmr.msra.gmra.mxu0 %v132_v46 }
  0xa0   :  { %v112_v47 = vpop.f32.mrf.mxu1 }
  0xa8   :  { %v123_v49 = vpop.f32.mrf.mxu1 }
  0xa9   :  { %v124_v50 = vadd.f32 %v123_v49, %v85_v48 }
  0xab   :  { %v131_v51 = vmax.f32 %v124_v50, 0.0 }
  0xad   :  { %v133_v52 = vpack.c.bf16 %v131_v51, %v131_v51 }
  0xaf   :  { %353 = vmatmul.bf16.vlgmr.msra.gmra.mxu3 %v133_v52  ;;  %379 = vmatmul.bf16.vlgmr.msra.gmra.mxu1 %v133_v52 }
  0xb0   :  { %v125_v53 = vpop.f32.mrf.mxu1 }
 0x11c   :  { %v367_v4 = vpop.f32.mrf.mxu0 }
 0x11d   :  { %v368_v13 = vadd.f32 %v367_v4, %v169_v11 }
 0x122   :  { %v341_v7 = vpop.f32.mrf.mxu2 }
 0x123   :  { %v342_v18 = vadd.f32 %v341_v7, %v168_v15 }
 0x124   :  { %v369_v9 = vpop.f32.mrf.mxu0 }
 0x12a   :  { %v343_v12 = vpop.f32.mrf.mxu2 }
 0x12c   :  { %v380_v14 = vpop.f32.mrf.mxu1 }
 0x12d   :  { %v381_v16 = vadd.f32 %v380_v14, %v368_v13 }
 0x12f   :  { %v388_v17 = vmax.f32 %v381_v16, 0.0 }
 0x131   :  { %v390_v19 = vpack.c.bf16 %v388_v17, %v388_v17 }
 0x132   :  { %v354_v20 = vpop.f32.mrf.mxu3 }
 0x133   :  { %v355_v21 = vadd.f32 %v354_v20, %v342_v18  ;;  %544 = vmatmul.bf16.vlgmr.msrb.gmra.mxu3 %v390_v19 }
 0x134   :  { %v382_v22 = vpop.f32.mrf.mxu1 }
 0x135   :  { %v387_v23 = vmax.f32 %v355_v21, 0.0 }
 0x137   :  { %v389_v24 = vpack.c.bf16 %v387_v23, %v387_v23 }
 0x139   :  { %531 = vmatmul.bf16.vlgmr.msrb.gmra.mxu2 %v389_v24 }
 0x13a   :  { %v356_v25 = vpop.f32.mrf.mxu3 }
 0x1b6   :  { %v545_v30 = vpop.f32.mrf.mxu3 }
 0x1bc   :  { %v532_v32 = vpop.f32.mrf.mxu2 }
 0x1bd   :  { %v533_v33 = vadd.f32 %v931_v31, %v532_v32 }
 0x1be   :  { %v547_v34 = vpop.f32.mrf.mxu3 }
 0x1bf   :  { %v546_v35 = vadd.f32 %v545_v30, %v533_v33 }
 0x1c1   :  { %v551_v36 = vmax.f32 %v546_v35, 0.0 }
 0x1c3   :  { %v552_v37 = vpack.c.bf16 %v551_v36, %v551_v36 }
 0x1c4   :  { %v534_v38 = vpop.f32.mrf.mxu2 }
 0x1c5   :  { %629 = vmatmul.bf16.vlgmr.msrb.gmra.mxu0 %v552_v37 }
 0x242   :  { %v630_v40 = vpop.f32.mrf.mxu0 }
 0x243   :  { %v631_v41 = vadd.f32 %v932_v39, %v630_v40 }
 0x245   :  { %635 = vst.msk [vmem:[%s1107_s9] sm:$0xff] %vm634_vm2, %v631_v41 }
 0x24a   :  { %v632_v42 = vpop.f32.mrf.mxu0 }
 0x24b   :  { %640 = vsyncpa [#allocation3], 1 }
 0x24c   :  { %641 = vsyncpa [#allocation5], 1 }

// kernel: tpu_custom_call.1
= control target key start
LH: loop header
LB: loop body
LE: loop exit
PB: predicated region body
PF: predicated region fallthrough
CT: control target
= control target key end

     0   :  { %14 = vsyncpa [#allocation3], 0  ;;  %s1098_s0 = inlined_call_operand.vmem [shape: bf16[8,4], index: 0, kind: input, shape index: {}]   ;;  %s1099_s1 = inlined_call_operand.vmem [shape: bf16[4,256], index: 1, kind: input, shape index: {}]   ;;  %s1100_s2 = inlined_call_operand.vmem [shape: f32[1,256], index: 2, kind: input, shape index: {}]   ;;  %s1101_s3 = inlined_call_operand.hbm [shape: bf16[256,256], index: 3, kind: input, shape index: {}]   ;;  %s1102_s4 = inlined_call_operand.vmem [shape: f32[1,256], index: 4, kind: input, shape index: {}]   ;;  %s1103_s5 = inlined_call_operand.hbm [shape: bf16[256,128], index: 5, kind: input, shape index: {}]   ;;  %s1104_s6 = inlined_call_operand.vmem [shape: f32[1,128], index: 6, kind: input, shape index: {}]   ;;  %s1105_s7 = inlined_call_operand.hbm [shape: bf16[128,128], index: 7, kind: input, shape index: {}]   ;;  %s1106_s8 = inlined_call_operand.vmem [shape: f32[1,128], index: 8, kind: input, shape index: {}]   ;;  %s1107_s9 = inlined_call_operand.vmem [shape: f32[8,2], index: 9, kind: output, shape index: {}]  }
   0x1   :  { %15 = vsyncpa [#allocation5], 0  ;;  %s41_s11 = sshll.u32 %s1103_s5, 4  ;;  %s1009_s12 = smov [#allocation4]   ;;  %s42_s11 = int_to_ptr.hbm [resolvable:$true] %s41_s11 }
   0x2   :  { %s43_s13 = sshll.u32 %s1009_s12, 4  ;;  %s26_s16 = sshll.u32 %s1101_s3, 4  ;;  %s44_s13 = int_to_ptr.vmem [resolvable:$true] %s43_s13  ;;  %s27_s16 = int_to_ptr.hbm [resolvable:$true] %s26_s16 }
   0x3   :  { %s1010_s17 = smov 64   ;;  %s1011_s18 = smov 4  }
   0x4   :  { %49 = dma.hbm_to_vmem [thread:$0]  %s42_s11, 2048, %s44_s13, [#allocation5], %s1010_s17, %s1010_s17, %s1011_s18  }
   0x5   :  { %s1012_s19 = smov [#allocation2]   ;;  %s1013_s21 = smov 128  }
   0x6   :  { %s28_s20 = sshll.u32 %s1012_s19, 4  ;;  %s1014_s22 = smov 8   ;;  %s29_s20 = int_to_ptr.vmem [resolvable:$true] %s28_s20 }
   0x7   :  { %34 = dma.hbm_to_vmem [thread:$0]  %s27_s16, 4096, %s29_s20, [#allocation3], %s1013_s21, %s1013_s21, %s1014_s22  }
   0x8   :  { %s56_s24 = sshll.u32 %s1105_s7, 4  ;;  %s1015_s25 = smov [#allocation6]   ;;  %s57_s24 = int_to_ptr.hbm [resolvable:$true] %s56_s24 }
   0x9   :  { %s58_s26 = sshll.u32 %s1015_s25, 4  ;;  %s59_s26 = int_to_ptr.vmem [resolvable:$true] %s58_s26 }
   0xa   :  { %64 = dma.hbm_to_vmem [thread:$0]  %s57_s24, 1024, %s59_s26, [#allocation5], %s1010_s17, %s1010_s17, %s1011_s18  }
   0xb   :  { %1005 = dma.done.wait [#allocation3], 4096  }
   0xc   :  { %1006 = vsyncadd [#allocation3], 4294963200 }
   0xd   :  { %1007 = dma.done.wait [#allocation5], 3072  }
   0xe   :  { %1008 = vsyncadd [#allocation5], 4294964224  ;;  %v81_v0 = vld [vmem:[%s1099_s1] sm:$0xf]  ;;  %v702_v1 = vld [vmem:[#allocation2 + $0x70] sm:$0xf] }
   0xf   :  { %89 = vst [vmem:[#allocation1] ss:$4 sm:$0xff] %v81_v0  ;;  %v883_v2 = vld [vmem:[#allocation2 + $0x74] sm:$0xf0]  ;;  %v882_v3 = vld [vmem:[#allocation2 + $0x74] sm:$0xf] }
  0x10   :  { %v703_v4 = vor.u32 %v883_v2, %v702_v1  ;;  %v704_v5 = vld [vmem:[#allocation2 + $0x78] sm:$0xf0]  ;;  %v694_v6 = vld [vmem:[#allocation2 + $0x60] sm:$0xf]  ;;  %v881_v7 = vld [vmem:[#allocation2 + $0x64] sm:$0xf0] }
  0x11   :  { %v707_v8 = vor.u32 %v882_v3, %v704_v5  ;;  %v880_v9 = vld [vmem:[#allocation2 + $0x64] sm:$0xf]  ;;  %v696_v10 = vld [vmem:[#allocation2 + $0x68] sm:$0xf0]  ;;  %v695_v11 = vor.u32 %v881_v7, %v694_v6  ;;  %v686_v13 = vld [vmem:[#allocation2 + $0x50] sm:$0xf] }
  0x12   :  { %332 = vmatpush.bf16.msra.mxu2 %v703_v4  ;;  %v699_v12 = vor.u32 %v880_v9, %v696_v10  ;;  %v879_v14 = vld [vmem:[#allocation2 + $0x54] sm:$0xf0]  ;;  %vm96_vm0 = vcmask 1041408   ;;  %vm92_vm1 = vcmask 31744   ;;  %v878_v15 = vld [vmem:[#allocation2 + $0x54] sm:$0xf] }
  0x13   :  { %358 = vmatpush.bf16.msra.mxu0 %v707_v8  ;;  %v688_v16 = vld [vmem:[#allocation2 + $0x58] sm:$0xf0]  ;;  %v678_v17 = vld [vmem:[#allocation2 + $0x40] sm:$0xf]  ;;  %v766_v18 = vld [vmem:[#allocation2 + $0xf0] sm:$0xf]  ;;  %v687_v23 = vor.u32 %v879_v14, %v686_v13 }
  0x14   :  { %v899_v19 = vld [vmem:[#allocation2 + $0xf4] sm:$0xf0]  ;;  %v691_v27 = vor.u32 %v878_v15, %v688_v16  ;;  %v877_v28 = vld [vmem:[#allocation2 + $0x44] sm:$0xf0]  ;;  %v898_v29 = vld [vmem:[#allocation2 + $0xf4] sm:$0xf] }
  0x15   :  { %v80_v21 = vld [vmem:[%s1098_s0] sm:$0xf]  ;;  %v767_v24 = vor.u32 %v899_v19, %v766_v18  ;;  %v876_v30 = vld [vmem:[#allocation2 + $0x44] sm:$0xf]  ;;  %v680_v31 = vld [vmem:[#allocation2 + $0x48] sm:$0xf0]  ;;  %v679_v36 = vor.u32 %v877_v28, %v678_v17 }
  0x16   :  { %v90_v20 = vld.sshfl [vmem:[#allocation1] sm:$0xff pattern:$0x73625140]  ;;  %v91_v22 = vld.sshfl [vmem:[#allocation1 + $0x8] sm:$0xff pattern:$0x73625140]  ;;  %333 = vmatpush.bf16.msra.mxu2 %v695_v11  ;;  %v683_v41 = vor.u32 %v876_v30, %v680_v31 }
  0x17   :  { %v97_v25 = vsel %vm96_vm0, %v90_v20, 0  ;;  %v99_v26 = vsel %vm96_vm0, %v91_v22, 0  ;;  %359 = vmatpush.bf16.msra.mxu0 %v699_v12  ;;  %345 = vmatpush.bf16.msra.mxu3 %v767_v24  ;;  %v768_v32 = vld [vmem:[#allocation2 + $0xf8] sm:$0xf0]  ;;  %v758_v34 = vld [vmem:[#allocation2 + $0xe0] sm:$0xf] }
  0x18   :  { %108 = vmatpush.bf16.msra.mxu1 %v97_v25  ;;  %v771_v33 = vor.u32 %v898_v29, %v768_v32  ;;  %v897_v35 = vld [vmem:[#allocation2 + $0xe4] sm:$0xf0]  ;;  %v670_v37 = vld [vmem:[#allocation2 + $0x30] sm:$0xf]  ;;  %v896_v39 = vld [vmem:[#allocation2 + $0xe4] sm:$0xf] }
  0x19   :  { %v759_v38 = vor.u32 %v897_v35, %v758_v34  ;;  %v760_v40 = vld [vmem:[#allocation2 + $0xe8] sm:$0xf0]  ;;  %v875_v42 = vld [vmem:[#allocation2 + $0x34] sm:$0xf0]  ;;  %v874_v43 = vld [vmem:[#allocation2 + $0x34] sm:$0xf] }
  0x1a   :  { %334 = vmatpush.bf16.msra.mxu2 %v687_v23  ;;  %v672_v44 = vld [vmem:[#allocation2 + $0x38] sm:$0xf0]  ;;  %v763_v45 = vor.u32 %v896_v39, %v760_v40  ;;  %v671_v46 = vor.u32 %v875_v42, %v670_v37  ;;  %v662_v48 = vld [vmem:[#allocation2 + $0x20] sm:$0xf]  ;;  %v873_v49 = vld [vmem:[#allocation2 + $0x24] sm:$0xf0] }
  0x1b   :  { %642 = vmatmul.msk.bf16.vlgmr.msra.gmra.mxu1 %vm92_vm1, %v80_v21  ;;  %360 = vmatpush.bf16.msra.mxu0 %v691_v27  ;;  %v675_v47 = vor.u32 %v874_v43, %v672_v44  ;;  %v872_v50 = vld [vmem:[#allocation2 + $0x24] sm:$0xf]  ;;  %v664_v51 = vld [vmem:[#allocation2 + $0x28] sm:$0xf0]  ;;  %v663_v52 = vor.u32 %v873_v49, %v662_v48  ;;  %v654_v54 = vld [vmem:[#allocation2 + $0x10] sm:$0xf] }
  0x1c   :  { %121 = vmatpush.bf16.msrb.mxu1 %v99_v26  ;;  %346 = vmatpush.bf16.msra.mxu3 %v759_v38  ;;  %v667_v53 = vor.u32 %v872_v50, %v664_v51  ;;  %v871_v55 = vld [vmem:[#allocation2 + $0x14] sm:$0xf0]  ;;  %v750_v56 = vld [vmem:[#allocation2 + $0xd0] sm:$0xf]  ;;  %v870_v59 = vld [vmem:[#allocation2 + $0x14] sm:$0xf] }
  0x1d   :  { %v655_v57 = vor.u32 %v871_v55, %v654_v54  ;;  %v895_v58 = vld [vmem:[#allocation2 + $0xd4] sm:$0xf0]  ;;  %v656_v60 = vld [vmem:[#allocation2 + $0x18] sm:$0xf0]  ;;  %v894_v63 = vld [vmem:[#allocation2 + $0xd4] sm:$0xf] }
  0x1e   :  { %335 = vmatpush.bf16.msra.mxu2 %v679_v36  ;;  %v751_v61 = vor.u32 %v895_v58, %v750_v56  ;;  %v659_v62 = vor.u32 %v870_v59, %v656_v60  ;;  %v752_v0 = vld [vmem:[#allocation2 + $0xd8] sm:$0xf0]  ;;  %v646_v2 = vld [vmem:[#allocation2] sm:$0xf]  ;;  %v869_v3 = vld [vmem:[#allocation2 + $0x4] sm:$0xf0] }
  0x1f   :  { %361 = vmatpush.bf16.msra.mxu0 %v683_v41  ;;  %v755_v1 = vor.u32 %v894_v63, %v752_v0  ;;  %v742_v4 = vld [vmem:[#allocation2 + $0xc0] sm:$0xf]  ;;  %v647_v5 = vor.u32 %v869_v3, %v646_v2  ;;  %v893_v6 = vld [vmem:[#allocation2 + $0xc4] sm:$0xf0]  ;;  %v868_v7 = vld [vmem:[#allocation2 + $0x4] sm:$0xf] }
  0x20   :  { %371 = vmatpush.bf16.msra.mxu1 %v771_v33  ;;  %347 = vmatpush.bf16.msra.mxu3 %v751_v61  ;;  %v648_v8 = vld [vmem:[#allocation2 + $0x8] sm:$0xf0]  ;;  %v743_v9 = vor.u32 %v893_v6, %v742_v4  ;;  %v892_v11 = vld [vmem:[#allocation2 + $0xc4] sm:$0xf]  ;;  %v734_v14 = vld [vmem:[#allocation2 + $0xb0] sm:$0xf] }
  0x21   :  { %v651_v10 = vor.u32 %v868_v7, %v648_v8  ;;  %v744_v12 = vld [vmem:[#allocation2 + $0xc8] sm:$0xf0]  ;;  %v891_v15 = vld [vmem:[#allocation2 + $0xb4] sm:$0xf0]  ;;  %v890_v16 = vld [vmem:[#allocation2 + $0xb4] sm:$0xf] }
  0x22   :  { %336 = vmatpush.bf16.msra.mxu2 %v671_v46  ;;  %v747_v13 = vor.u32 %v892_v11, %v744_v12  ;;  %v735_v17 = vor.u32 %v891_v15, %v734_v14  ;;  %v736_v18 = vld [vmem:[#allocation2 + $0xb8] sm:$0xf0]  ;;  %v726_v20 = vld [vmem:[#allocation2 + $0xa0] sm:$0xf]  ;;  %v888_v22 = vld [vmem:[#allocation2 + $0xa4] sm:$0xf] }
  0x23   :  { %362 = vmatpush.bf16.msra.mxu0 %v675_v47  ;;  %v739_v19 = vor.u32 %v890_v16, %v736_v18  ;;  %v728_v24 = vld [vmem:[#allocation2 + $0xa8] sm:$0xf0]  ;;  %v718_v26 = vld [vmem:[#allocation2 + $0x90] sm:$0xf]  ;;  %v887_v27 = vld [vmem:[#allocation2 + $0x94] sm:$0xf0] }
  0x24   :  { %372 = vmatpush.bf16.msra.mxu1 %v763_v45  ;;  %348 = vmatpush.bf16.msra.mxu3 %v743_v9  ;;  %v731_v25 = vor.u32 %v888_v22, %v728_v24  ;;  %v886_v28 = vld [vmem:[#allocation2 + $0x94] sm:$0xf]  ;;  %v719_v29 = vor.u32 %v887_v27, %v718_v26  ;;  %v720_v30 = vld [vmem:[#allocation2 + $0x98] sm:$0xf0]  ;;  %v710_v32 = vld [vmem:[#allocation2 + $0x80] sm:$0xf] }
  0x25   :  { %v723_v31 = vor.u32 %v886_v28, %v720_v30  ;;  %v885_v33 = vld [vmem:[#allocation2 + $0x84] sm:$0xf0]  ;;  %v884_v34 = vld [vmem:[#allocation2 + $0x84] sm:$0xf]  ;;  %v712_v36 = vld [vmem:[#allocation2 + $0x88] sm:$0xf0] }
  0x26   :  { %337 = vmatpush.bf16.msra.mxu2 %v663_v52  ;;  %v711_v35 = vor.u32 %v885_v33, %v710_v32  ;;  %v715_v37 = vor.u32 %v884_v34, %v712_v36  ;;  %v915_v38 = vld [vmem:[#allocation4 + $0x78] sm:$0xff]  ;;  %v914_v41 = vld [vmem:[#allocation4 + $0x70] sm:$0xff]  ;;  %v913_v54 = vld [vmem:[#allocation4 + $0x68] sm:$0xff]  ;;  %vm634_vm2 = vcmask 15360  }
  0x27   :  { %363 = vmatpush.bf16.msra.mxu0 %v667_v53  ;;  %v907_v39 = vld [vmem:[#allocation4 + $0x38] sm:$0xff]  ;;  %v906_v55 = vld [vmem:[#allocation4 + $0x30] sm:$0xff]  ;;  %v912_v56 = vld [vmem:[#allocation4 + $0x60] sm:$0xff] }
  0x28   :  { %373 = vmatpush.bf16.msra.mxu1 %v755_v1  ;;  %349 = vmatpush.bf16.msra.mxu3 %v735_v17  ;;  %v82_v40 = vld [vmem:[%s1100_s2] sm:$0x3]  ;;  %v904_v59 = vld [vmem:[#allocation4 + $0x20] sm:$0xff]  ;;  %v910_v60 = vld [vmem:[#allocation4 + $0x50] sm:$0xff] }
  0x29   :  { %v84_v42 = vperm.slane %v82_v40, 0  ;;  %v85_v48 = vperm.slane %v82_v40, 1  ;;  %v911_v58 = vld [vmem:[#allocation4 + $0x58] sm:$0xff]  ;;  %v902_v63 = vld [vmem:[#allocation4 + $0x10] sm:$0xff]  ;;  %v908_v0 = vld [vmem:[#allocation4 + $0x40] sm:$0xff] }
  0x2a   :  { %338 = vmatpush.bf16.msra.mxu2 %v655_v57  ;;  %v905_v57 = vld [vmem:[#allocation4 + $0x28] sm:$0xff]  ;;  %v903_v61 = vld [vmem:[#allocation4 + $0x18] sm:$0xff]  ;;  %v900_v2 = vld [vmem:[#allocation4] sm:$0xff] }
  0x2b   :  { %643 = vmatmul.msk.bf16.vlgmr.msrb.gmra.mxu1 %vm92_vm1, %v80_v21  ;;  %364 = vmatpush.bf16.msra.mxu0 %v659_v62  ;;  %v889_v21 = vld [vmem:[#allocation2 + $0xa4] sm:$0xf0]  ;;  %v923_v3 = vld [vmem:[#allocation6 + $0x38] sm:$0xff]  ;;  %v918_v27 = vld [vmem:[#allocation6 + $0x10] sm:$0xff] }
  0x2c   :  { %374 = vmatpush.bf16.msra.mxu1 %v747_v13  ;;  %v727_v23 = vor.u32 %v889_v21, %v726_v20  ;;  %v909_v62 = vld [vmem:[#allocation4 + $0x48] sm:$0xff]  ;;  %v166_v8 = vld [vmem:[%s1102_s4] sm:$0x3] }
  0x2d   :  { %v901_v1 = vld [vmem:[#allocation4 + $0x8] sm:$0xff]  ;;  %v169_v11 = vperm.slane %v166_v8, 1  ;;  %v168_v15 = vperm.slane %v166_v8, 0  ;;  %v919_v26 = vld [vmem:[#allocation6 + $0x18] sm:$0xff] }
  0x2e   :  { %339 = vmatpush.bf16.msra.mxu2 %v647_v5  ;;  %350 = vmatpush.bf16.msra.mxu3 %v727_v23  ;;  %v922_v5 = vld [vmem:[#allocation6 + $0x30] sm:$0xff]  ;;  %v921_v6 = vld [vmem:[#allocation6 + $0x28] sm:$0xff] }
  0x2f   :  { %365 = vmatpush.bf16.msra.mxu0 %v651_v10  ;;  %v920_v10 = vld [vmem:[#allocation6 + $0x20] sm:$0xff]  ;;  %v917_v28 = vld [vmem:[#allocation6 + $0x8] sm:$0xff] }
  0x30   :  { %375 = vmatpush.bf16.msra.mxu1 %v739_v19 }
  0x32   :  { %351 = vmatpush.bf16.msra.mxu3 %v719_v29  ;;  %523 = vmatpush.bf16.msrb.mxu2 %v907_v39  ;;  %v916_v29 = vld [vmem:[#allocation6] sm:$0xff]  ;;  %v932_v39 = vld [vmem:[%s1106_s8] ss:$0 sm:$0xff] }
  0x33   :  { %621 = vmatpush.bf16.msrb.mxu0 %v923_v3 }
  0x34   :  { %376 = vmatpush.bf16.msra.mxu1 %v731_v25 }
  0x36   :  { %352 = vmatpush.bf16.msra.mxu3 %v711_v35  ;;  %524 = vmatpush.bf16.msrb.mxu2 %v906_v55 }
  0x37   :  { %622 = vmatpush.bf16.msrb.mxu0 %v922_v5 }
  0x38   :  { %377 = vmatpush.bf16.msra.mxu1 %v723_v31  ;;  %v931_v31 = vld [vmem:[%s1104_s6] ss:$0 sm:$0xff] }
  0x3a   :  { %536 = vmatpush.bf16.msrb.mxu3 %v915_v38  ;;  %525 = vmatpush.bf16.msrb.mxu2 %v905_v57 }
  0x3b   :  { %623 = vmatpush.bf16.msrb.mxu0 %v921_v6 }
  0x3c   :  { %378 = vmatpush.bf16.msra.mxu1 %v715_v37 }
  0x3e   :  { %537 = vmatpush.bf16.msrb.mxu3 %v914_v41  ;;  %526 = vmatpush.bf16.msrb.mxu2 %v904_v59 }
  0x3f   :  { %624 = vmatpush.bf16.msrb.mxu0 %v920_v10 }
  0x42   :  { %538 = vmatpush.bf16.msrb.mxu3 %v913_v54  ;;  %527 = vmatpush.bf16.msrb.mxu2 %v903_v61 }
  0x43   :  { %625 = vmatpush.bf16.msrb.mxu0 %v919_v26 }
  0x46   :  { %539 = vmatpush.bf16.msrb.mxu3 %v912_v56  ;;  %528 = vmatpush.bf16.msrb.mxu2 %v902_v63 }
  0x47   :  { %626 = vmatpush.bf16.msrb.mxu0 %v918_v27 }
  0x4a   :  { %540 = vmatpush.bf16.msrb.mxu3 %v911_v58  ;;  %529 = vmatpush.bf16.msrb.mxu2 %v901_v1 }
  0x4b   :  { %627 = vmatpush.bf16.msrb.mxu0 %v917_v28 }
  0x4e   :  { %541 = vmatpush.bf16.msrb.mxu3 %v910_v60  ;;  %530 = vmatpush.bf16.msrb.mxu2 %v900_v2 }
  0x4f   :  { %628 = vmatpush.bf16.msrb.mxu0 %v916_v29 }
  0x52   :  { %542 = vmatpush.bf16.msrb.mxu3 %v909_v62 }
  0x56   :  { %543 = vmatpush.bf16.msrb.mxu3 %v908_v0 }
  0x98   :  { %v110_v43 = vpop.f32.mrf.mxu1 }
  0x99   :  { %v111_v44 = vadd.f32 %v110_v43, %v84_v42 }
  0x9b   :  { %v130_v45 = vmax.f32 %v111_v44, 0.0 }
  0x9d   :  { %v132_v46 = vpack.c.bf16 %v130_v45, %v130_v45 }
  0x9f   :  { %340 = vmatmul.bf16.vlgmr.msra.gmra.mxu2 %v132_v46  ;;  %366 = vmatmul.bf16.vlgmr.msra.gmra.mxu0 %v132_v46 }
  0xa0   :  { %v112_v47 = vpop.f32.mrf.mxu1 }
  0xa8   :  { %v123_v49 = vpop.f32.mrf.mxu1 }
  0xa9   :  { %v124_v50 = vadd.f32 %v123_v49, %v85_v48 }
  0xab   :  { %v131_v51 = vmax.f32 %v124_v50, 0.0 }
  0xad   :  { %v133_v52 = vpack.c.bf16 %v131_v51, %v131_v51 }
  0xaf   :  { %353 = vmatmul.bf16.vlgmr.msra.gmra.mxu3 %v133_v52  ;;  %379 = vmatmul.bf16.vlgmr.msra.gmra.mxu1 %v133_v52 }
  0xb0   :  { %v125_v53 = vpop.f32.mrf.mxu1 }
 0x11c   :  { %v367_v4 = vpop.f32.mrf.mxu0 }
 0x11d   :  { %v368_v13 = vadd.f32 %v367_v4, %v169_v11 }
 0x122   :  { %v341_v7 = vpop.f32.mrf.mxu2 }
 0x123   :  { %v342_v18 = vadd.f32 %v341_v7, %v168_v15 }
 0x124   :  { %v369_v9 = vpop.f32.mrf.mxu0 }
 0x12a   :  { %v343_v12 = vpop.f32.mrf.mxu2 }
 0x12c   :  { %v380_v14 = vpop.f32.mrf.mxu1 }
 0x12d   :  { %v381_v16 = vadd.f32 %v380_v14, %v368_v13 }
 0x12f   :  { %v388_v17 = vmax.f32 %v381_v16, 0.0 }
 0x131   :  { %v390_v19 = vpack.c.bf16 %v388_v17, %v388_v17 }
 0x132   :  { %v354_v20 = vpop.f32.mrf.mxu3 }
 0x133   :  { %v355_v21 = vadd.f32 %v354_v20, %v342_v18  ;;  %544 = vmatmul.bf16.vlgmr.msrb.gmra.mxu3 %v390_v19 }
 0x134   :  { %v382_v22 = vpop.f32.mrf.mxu1 }
 0x135   :  { %v387_v23 = vmax.f32 %v355_v21, 0.0 }
 0x137   :  { %v389_v24 = vpack.c.bf16 %v387_v23, %v387_v23 }
 0x139   :  { %531 = vmatmul.bf16.vlgmr.msrb.gmra.mxu2 %v389_v24 }
 0x13a   :  { %v356_v25 = vpop.f32.mrf.mxu3 }
 0x1b6   :  { %v545_v30 = vpop.f32.mrf.mxu3 }
 0x1bc   :  { %v532_v32 = vpop.f32.mrf.mxu2 }
 0x1bd   :  { %v533_v33 = vadd.f32 %v931_v31, %v532_v32 }
 0x1be   :  { %v547_v34 = vpop.f32.mrf.mxu3 }
 0x1bf   :  { %v546_v35 = vadd.f32 %v545_v30, %v533_v33 }
 0x1c1   :  { %v551_v36 = vmax.f32 %v546_v35, 0.0 }
 0x1c3   :  { %v552_v37 = vpack.c.bf16 %v551_v36, %v551_v36 }
 0x1c4   :  { %v534_v38 = vpop.f32.mrf.mxu2 }
 0x1c5   :  { %629 = vmatmul.bf16.vlgmr.msrb.gmra.mxu0 %v552_v37 }
 0x242   :  { %v630_v40 = vpop.f32.mrf.mxu0 }
 0x243   :  { %v631_v41 = vadd.f32 %v932_v39, %v630_v40 }
 0x245   :  { %635 = vst.msk [vmem:[%s1107_s9] sm:$0xff] %vm634_vm2, %v631_v41 }
 0x24a   :  { %v632_v42 = vpop.f32.mrf.mxu0 }
 0x24b   :  { %640 = vsyncpa [#allocation3], 1 }
 0x24c   :  { %641 = vsyncpa [#allocation5], 1 }

</bundles_post_ra>
